<compile_context>
chip_gen: v7x
topology: tpu7x:2x2x1
jax: 0.10.0
libtpu: 0.0.40
codegen_flags: <defaults>
</compile_context>

<pallas_src>
import functools

import jax
import jax.numpy as jnp
import numpy as np
from jax import lax
from jax.experimental import pallas as pl
from jax.experimental.pallas import tpu as pltpu

SOFT_CLAMP_VALUE = 5.0
BACKGROUND_CLAMP = -15.0
FOCAL_ALPHA = 0.5
LOG_2 = 0.69314  # constant used verbatim in the reference forward()
LANES = 128


# ---------------------------------------------------------------------------
# elementwise helpers (pure jnp; usable both inside the kernel and in the ref)
# ---------------------------------------------------------------------------
def _softplus(v):
    return jnp.maximum(v, 0.0) + jnp.log1p(jnp.exp(-jnp.abs(v)))


def _soft_clamp(v):
    # components.SoftClamp(5.0): x > max -> max + log(1 - max + x)
    return jnp.where(
        v > SOFT_CLAMP_VALUE,
        SOFT_CLAMP_VALUE + jnp.log(jnp.maximum(1.0 - SOFT_CLAMP_VALUE + v, 1e-8)),
        v,
    )


# ---------------------------------------------------------------------------
# per-chunk loss math (runs on dense (chunk, 128) tiles inside the kernel)
# ---------------------------------------------------------------------------
def _chunk_losses(x, t, *, nc, nv, ns):
    """x: (1+nc+2nv+ns, R, 128) f32, t: (nc+3nv+ns, R, 128) f32.

    Returns four (R, 128) masked, unweighted per-position contributions:
    (conf_background, conf, regression, scale).  Invalid positions (per the
    reference forward() masks) contribute exactly 0.
    """
    # --- masks (reference: torch.all over the channel axis; isfinite like ref)
    t_conf = t[0]                                   # nc == 1 (asserted)
    bg_mask = t_conf == 0.0
    c_mask = t_conf > 0.0
    reg_mask = jnp.isfinite(t[nc])
    for ch in range(nc + 1, 1 + 2 * nv):            # reference slice nc : 1+2nv
        reg_mask = jnp.logical_and(reg_mask, jnp.isfinite(t[ch]))
    scale_mask = jnp.isfinite(t[nc + 3 * nv])
    for s in range(1, ns):
        scale_mask = jnp.logical_and(scale_mask, jnp.isfinite(t[nc + 3 * nv + s]))

    x_logs2 = x[0]
    x_conf = x[1]                                   # nc == 1

    # --- components.BceL2-style focal BCE with logits (alpha=0.5, gamma=1) ---
    t01 = jnp.where(t_conf > 0.0, 1.0, t_conf)
    xc = jnp.where(jnp.logical_and(t01 == 0.0, x_conf < BACKGROUND_CLAMP),
                   BACKGROUND_CLAMP, x_conf)
    e = jnp.exp(-jnp.abs(xc))                        # single exp reused below
    bce = jnp.maximum(xc, 0.0) - xc * t01 + jnp.log1p(e)
    inv_1pe = pl.reciprocal(1.0 + e, approx=True)    # EUP reciprocal
    p = jnp.where(xc >= 0.0, inv_1pe, e * inv_1pe)   # sigmoid(xc) without 2nd exp
    pt = p * t01 + (1.0 - p) * (1.0 - t01)
    bce = FOCAL_ALPHA * (1.0 - pt) * bce
    bce = jnp.where(t01 != t_conf, bce * t_conf, bce)  # fractional-target weight
    l_bce = _soft_clamp(bce)

    s_bg = jnp.where(bg_mask, l_bce, 0.0)

    x_logs2_c = 3.0 * jnp.tanh(x_logs2 * (1.0 / 3.0))
    l_conf = 0.5 * l_bce * jnp.exp(-x_logs2_c) + 0.5 * x_logs2_c
    s_c = jnp.where(c_mask, l_conf, 0.0)

    # --- regression (Laplace-style, uncertainty-weighted) ---
    x_logb = 0.5 * x_logs2_c + LOG_2                 # reuses the tanh above
    reg_factor = jnp.exp(-x_logb)
    # softplus(x_scales): computed once, reused for NaN imputation + scale loss
    xs_sp = [_softplus(x[1 + nc + 2 * nv + s]) for s in range(ns)]

    s_reg = jnp.zeros_like(s_bg)
    for v in range(nv):
        dx = x[1 + nc + 2 * v] - t[nc + 2 * v]
        dy = x[1 + nc + 2 * v + 1] - t[nc + 2 * v + 1]
        sm = t[nc + 2 * nv + v]
        sm = jnp.where(jnp.isnan(sm), 0.0, sm)       # impute invalid sigma_min
        d = jnp.sqrt(dx * dx + dy * dy + sm * sm)
        ts = t[nc + 3 * nv + v]
        # reference: NaN target scales imputed with softplus(x_scales)
        denom = jnp.maximum(jnp.where(jnp.isnan(ts), xs_sp[v], ts), 0.1)
        l_r = _soft_clamp(d * pl.reciprocal(denom, approx=True))
        l_r = l_r * reg_factor + x_logb              # Laplace uncertainty weight
        s_reg = s_reg + jnp.where(reg_mask, l_r, 0.0)

    # --- scale (relative L1) ---
    s_sc = jnp.zeros_like(s_bg)
    for s in range(ns):
        ts = t[nc + 3 * nv + s]
        l_s = _soft_clamp(jnp.abs(xs_sp[s] - ts) * pl.reciprocal(0.1 + ts, approx=True))
        s_sc = s_sc + jnp.where(scale_mask, l_s, 0.0)

    return s_bg, s_c, s_reg, s_sc


# ---------------------------------------------------------------------------
# Pallas kernel
# ---------------------------------------------------------------------------
def _composite_loss_kernel(x_ref, t_ref, out_ref, *, nc, nv, ns, chunk):
    # out block (4, 128) is per-field and resident across the row-tile axis.
    @pl.when(pl.program_id(1) == 0)
    def _init():
        out_ref[...] = jnp.zeros_like(out_ref)

    rows_tile = x_ref.shape[1]
    n_chunks = rows_tile // chunk

    def body(i, carry):
        a_bg, a_c, a_reg, a_sc = carry
        row0 = pl.multiple_of(i * chunk, chunk)
        x = x_ref[:, pl.ds(row0, chunk), :].astype(jnp.float32)
        t = t_ref[:, pl.ds(row0, chunk), :].astype(jnp.float32)
        s_bg, s_c, s_reg, s_sc = _chunk_losses(x, t, nc=nc, nv=nv, ns=ns)
        return (a_bg + s_bg, a_c + s_c, a_reg + s_reg, a_sc + s_sc)

    z = jnp.zeros((chunk, LANES), jnp.float32)
    a_bg, a_c, a_reg, a_sc = lax.fori_loop(0, n_chunks, body, (z, z, z, z))

    part = jnp.concatenate(
        [jnp.sum(a, axis=0, keepdims=True) for a in (a_bg, a_c, a_reg, a_sc)],
        axis=0,
    )  # (4, 128)
    out_ref[...] = out_ref[...] + part


# ---------------------------------------------------------------------------
# wrapper
# ---------------------------------------------------------------------------
def composite_loss(x, t, training_weights=None, *,
                   n_confidences=1, n_vectors=2, n_scales=2,
                   rows_per_tile=256, row_chunk=8):
    if t is None:
        return [None, None, None]

    nc, nv, ns = n_confidences, n_vectors, n_scales
    B, C, cx, H, W = x.shape
    ct = t.shape[2]
    assert cx == 1 + nc + 2 * nv + ns
    assert ct == nc + 3 * nv + ns
    assert nc == 1, "reference slicing `nc : 1 + 2*n_vectors` assumes n_confidences == 1"
    assert ns >= nv  # regression normalizes vector v by scale channel v
    assert rows_per_tile % row_chunk == 0

    n = H * W
    rows = pl.cdiv(n, LANES)
    rows_tile = min(rows_per_tile, pl.cdiv(rows, row_chunk) * row_chunk)
    rows_pad = pl.cdiv(rows, rows_tile) * rows_tile
    n_pad = rows_pad * LANES

    # Free reshapes only (no transpose, no astype): channels stay on a major
    # axis, positions become a lane-dense (rows, 128) minor block.
    x3 = x.reshape(B * C, cx, n)
    t3 = t.reshape(B * C, ct, n)
    if n_pad != n:
        # Single copy only when H*W isn't tile-aligned; NaN-padding t makes
        # every mask False at padded positions (x padding value is irrelevant).
        x3 = jnp.pad(x3, ((0, 0), (0, 0), (0, n_pad - n)))
        t3 = jnp.pad(t3, ((0, 0), (0, 0), (0, n_pad - n)), constant_values=jnp.nan)
    x4 = x3.reshape(B * C, cx, rows_pad, LANES)
    t4 = t3.reshape(B * C, ct, rows_pad, LANES)

    kernel = functools.partial(_composite_loss_kernel, nc=nc, nv=nv, ns=ns,
                               chunk=row_chunk)
    acc = pl.pallas_call(
        kernel,
        out_shape=jax.ShapeDtypeStruct((B * C, 4, LANES), jnp.float32),
        grid_spec=pltpu.PrefetchScalarGridSpec(
            num_scalar_prefetch=0,
            grid=(B * C, rows_pad // rows_tile),
            in_specs=[
                pl.BlockSpec((pl.Squeezed(), cx, rows_tile, LANES),
                             lambda f, r: (f, 0, r, 0)),
                pl.BlockSpec((pl.Squeezed(), ct, rows_tile, LANES),
                             lambda f, r: (f, 0, r, 0)),
            ],
            out_specs=pl.BlockSpec((pl.Squeezed(), 4, LANES),
                                   lambda f, r: (f, 0, 0)),
        ),
        compiler_params=pltpu.CompilerParams(
            dimension_semantics=("parallel", "arbitrary")),
    )(x4, t4)

    # Per-field training weights are applied to the tiny per-field partials;
    # no (1, N) weight plane ever touches HBM.
    if training_weights is None:
        w_field = jnp.ones((B * C,), jnp.float32)
    else:
        tw = jnp.asarray(training_weights, jnp.float32).reshape(C)
        w_field = jnp.broadcast_to(tw[None, :], (B, C)).reshape(B * C)

    sums = jnp.sum(acc * w_field[:, None, None], axis=(0, 2))
    batch_size = B
    return [(sums[0] + sums[1]) / batch_size,
            sums[2] / batch_size,
            sums[3] / batch_size]


# ---------------------------------------------------------------------------
# independent pure-JAX reference (mirrors the torch forward; exact divides,
# separate sigmoid/tanh/softplus evaluations)
# ---------------------------------------------------------------------------
def composite_loss_reference(x, t, training_weights, *,
                             n_confidences, n_vectors, n_scales):
    nc, nv, ns = n_confidences, n_vectors, n_scales
    xf = jnp.moveaxis(x.astype(jnp.float32), 2, -1)   # (B, C, H, W, cx)
    tf = jnp.moveaxis(t.astype(jnp.float32), 2, -1)   # (B, C, H, W, ct)
    B, C = tf.shape[0], tf.shape[1]

    finite = jnp.isfinite(tf)
    t_conf_raw = tf[..., 0:nc]
    bg_mask = jnp.all(t_conf_raw == 0.0, axis=-1)
    c_mask = jnp.all(t_conf_raw > 0.0, axis=-1)
    reg_mask = jnp.all(finite[..., nc:1 + 2 * nv], axis=-1)
    scale_mask = jnp.all(finite[..., nc + 3 * nv:], axis=-1)

    x_logs2 = xf[..., 0]
    x_conf = xf[..., 1]
    x_regs = xf[..., 1 + nc:1 + nc + 2 * nv]
    x_scales = xf[..., 1 + nc + 2 * nv:]
    t_conf = tf[..., 0]
    t_regs = tf[..., nc:1 + 2 * nv]
    t_sigma_min = tf[..., nc + 2 * nv:nc + 3 * nv]
    t_scales = tf[..., nc + 3 * nv:]

    t01 = jnp.where(t_conf > 0.0, 1.0, t_conf)
    xc = jnp.where((t01 == 0.0) & (x_conf < BACKGROUND_CLAMP), BACKGROUND_CLAMP, x_conf)
    bce = jnp.maximum(xc, 0.0) - xc * t01 + jnp.log1p(jnp.exp(-jnp.abs(xc)))
    p = jax.nn.sigmoid(xc)
    pt = p * t01 + (1.0 - p) * (1.0 - t01)
    bce = FOCAL_ALPHA * (1.0 - pt) * bce
    bce = jnp.where(t01 != t_conf, bce * t_conf, bce)
    l_bce = _soft_clamp(bce)

    x_logs2_c = 3.0 * jnp.tanh(x_logs2 / 3.0)
    l_conf = 0.5 * l_bce * jnp.exp(-x_logs2_c) + 0.5 * x_logs2_c

    x_logb = 0.5 * (3.0 * jnp.tanh(x_logs2 / 3.0)) + LOG_2
    reg_factor = jnp.exp(-x_logb)
    sp_x_scales = _softplus(x_scales)
    t_scales_imp = jnp.where(jnp.isnan(t_scales), sp_x_scales, t_scales)

    l_reg_total = jnp.zeros_like(x_logs2)
    for v in range(nv):
        dx = x_regs[..., 2 * v] - t_regs[..., 2 * v]
        dy = x_regs[..., 2 * v + 1] - t_regs[..., 2 * v + 1]
        sm = jnp.where(jnp.isnan(t_sigma_min[..., v]), 0.0, t_sigma_min[..., v])
        d = jnp.sqrt(dx * dx + dy * dy + sm * sm)
        l_r = _soft_clamp(d / jnp.maximum(t_scales_imp[..., v], 0.1))
        l_r = l_r * reg_factor + x_logb
        l_reg_total = l_reg_total + jnp.where(reg_mask, l_r, 0.0)

    l_scale_total = jnp.zeros_like(x_logs2)
    for s in range(ns):
        ts = t_scales[..., s]
        l_s = _soft_clamp(jnp.abs(sp_x_scales[..., s] - ts) / (0.1 + ts))
        l_scale_total = l_scale_total + jnp.where(scale_mask, l_s, 0.0)

    if training_weights is None:
        w = jnp.ones((1, C, 1, 1), jnp.float32)
    else:
        w = jnp.asarray(training_weights, jnp.float32).reshape(1, C, 1, 1)

    s_bg = jnp.sum(w * jnp.where(bg_mask, l_bce, 0.0))
    s_c = jnp.sum(w * jnp.where(c_mask, l_conf, 0.0))
    s_reg = jnp.sum(w * l_reg_total)
    s_sc = jnp.sum(w * l_scale_total)
    return jnp.array([(s_bg + s_c) / B, s_reg / B, s_sc / B])


if __name__ == "__main__":
    B, C, H, W = 2, 4, 16, 16        # batch, n_fields, spatial
    nc, nv, ns = 1, 2, 2             # n_confidences, n_vectors, n_scales (CAF-like)
    cx = 1 + nc + 2 * nv + ns        # 8 prediction channels
    ct = nc + 3 * nv + ns            # 9 target channels

    key = jax.random.PRNGKey(0)
    kx, kc, km, kr, ksg, ksc, k1, k2 = jax.random.split(key, 8)

    x = 0.5 * jax.random.normal(kx, (B, C, cx, H, W), jnp.float32)

    # targets: mode 0 = background (conf==0), 1 = annotated (conf>0), 2 = invalid (NaN)
    mode = jax.random.randint(km, (B, C, 1, H, W), 0, 3)
    conf_val = 0.1 + 0.9 * jax.random.uniform(kc, (B, C, 1, H, W))
    nan = jnp.float32(jnp.nan)
    t_conf = jnp.where(mode == 0, 0.0, jnp.where(mode == 1, conf_val, nan))

    regs = jax.random.normal(kr, (B, C, 2 * nv, H, W))
    t_regs = jnp.where(mode == 1, regs, nan)

    sigma = jax.random.uniform(ksg, (B, C, nv, H, W), minval=0.1, maxval=1.0)
    t_sigma = jnp.where((mode == 1) & jax.random.bernoulli(k1, 0.7, (B, C, nv, H, W)),
                        sigma, nan)

    scales = jax.random.uniform(ksc, (B, C, ns, H, W), minval=0.5, maxval=3.0)
    t_scales = jnp.where((mode == 1) & jax.random.bernoulli(k2, 0.6, (B, C, ns, H, W)),
                         scales, nan)

    t = jnp.concatenate([t_conf, t_regs, t_sigma, t_scales], axis=2)

    # deterministic head_meta.training_weights (one per field)
    training_weights = jnp.array([1.0, 0.5, 2.0, 1.5], jnp.float32)

    losses = composite_loss(x, t, training_weights,
                            n_confidences=nc, n_vectors=nv, n_scales=ns)
    losses = [jax.block_until_ready(l) for l in losses]

    ref = composite_loss_reference(x, t, training_weights,
                                   n_confidences=nc, n_vectors=nv, n_scales=ns)
    np.testing.assert_allclose(np.array([float(l) for l in losses]),
                               np.asarray(ref), rtol=2e-3, atol=2e-3)
    assert all(bool(jnp.isfinite(l)) for l in losses)

    print("KERNEL_OK")
</pallas_src>

<mosaic_0001>
module attributes {stable_mosaic.version = 11 : i64} {
  func.func @_composite_loss_kernel(%arg0: i32, %arg1: i32, %arg2: memref<1x8x8x128xf32, #tpu.memory_space<vmem>>, %arg3: memref<1x9x8x128xf32, #tpu.memory_space<vmem>>, %arg4: memref<1x4x128xf32, #tpu.memory_space<vmem>>) attributes {dimension_semantics = [#tpu.dimension_semantics<parallel>, #tpu.dimension_semantics<arbitrary>], iteration_bounds = array<i64: 8, 1>, scalar_prefetch = 0 : i64, scratch_operands = 0 : i64, tpu.core_type = #tpu.core_type<tc>, window_params = [{transform_indices = @transform_0, window_bounds = array<i64: 1, 8, 8, 128>}, {transform_indices = @transform_1, window_bounds = array<i64: 1, 9, 8, 128>}, {transform_indices = @transform_2, window_bounds = array<i64: 1, 4, 128>}]} {
    %c0_i32 = arith.constant 0 : i32
    %0 = arith.cmpi eq, %arg1, %c0_i32 : i32
    %1 = arith.extui %0 : i1 to i32
    %c0_i32_0 = arith.constant 0 : i32
    %2 = arith.cmpi ne, %1, %c0_i32_0 : i32
    scf.if %2 {
      %cst_84 = arith.constant 0.000000e+00 : f32
      %299 = vector.broadcast %cst_84 : f32 to vector<4x128xf32>
      %c0_85 = arith.constant 0 : index
      %c0_86 = arith.constant 0 : index
      %c0_87 = arith.constant 0 : index
      %300 = vector.load %arg4[%c0_85, %c0_86, %c0_87] : memref<1x4x128xf32, #tpu.memory_space<vmem>>, vector<1x4x128xf32>
      %301 = vector.shape_cast %300 : vector<1x4x128xf32> to vector<4x128xf32>
      %302 = vector.shape_cast %299 : vector<4x128xf32> to vector<1x4x128xf32>
      tpu.vector_store %arg4[%c0_85, %c0_86, %c0_87], %302 {strides = array<i32>} : memref<1x4x128xf32, #tpu.memory_space<vmem>>, vector<1x4x128xf32>,
    } else {
    }
    %cst = arith.constant 0.000000e+00 : f32
    %3 = vector.broadcast %cst : f32 to vector<8x128xf32>
    %c0_i32_1 = arith.constant 0 : i32
    %c8_i32 = arith.constant 8 : i32
    %4 = arith.muli %c0_i32_1, %c8_i32 : i32
    %5 = tpu.assume_multiple %4, 8 : i32
    %c0 = arith.constant 0 : index
    %c0_2 = arith.constant 0 : index
    %6 = arith.index_cast %5 : i32 to index
    %c0_3 = arith.constant 0 : index
    %7 = vector.load %arg2[%c0, %c0_2, %6, %c0_3] : memref<1x8x8x128xf32, #tpu.memory_space<vmem>>, vector<1x8x8x128xf32>
    %8 = vector.shape_cast %7 : vector<1x8x8x128xf32> to vector<8x8x128xf32>
    %c0_4 = arith.constant 0 : index
    %c0_5 = arith.constant 0 : index
    %9 = arith.index_cast %5 : i32 to index
    %c0_6 = arith.constant 0 : index
    %10 = vector.load %arg3[%c0_4, %c0_5, %9, %c0_6] : memref<1x9x8x128xf32, #tpu.memory_space<vmem>>, vector<1x9x8x128xf32>
    %11 = vector.shape_cast %10 : vector<1x9x8x128xf32> to vector<9x8x128xf32>
    %12 = vector.extract_strided_slice %11 {offsets = [0, 0, 0], sizes = [1, 8, 128], strides = [1, 1, 1]} : vector<9x8x128xf32> to vector<1x8x128xf32>
    %13 = vector.shape_cast %12 : vector<1x8x128xf32> to vector<8x128xf32>
    %cst_7 = arith.constant 0.000000e+00 : f32
    %14 = vector.broadcast %cst_7 : f32 to vector<8x128xf32>
    %15 = arith.cmpf oeq, %13, %14 : vector<8x128xf32>
    %cst_8 = arith.constant 0.000000e+00 : f32
    %16 = vector.broadcast %cst_8 : f32 to vector<8x128xf32>
    %17 = arith.cmpf ogt, %13, %16 : vector<8x128xf32>
    %18 = vector.extract_strided_slice %11 {offsets = [1, 0, 0], sizes = [1, 8, 128], strides = [1, 1, 1]} : vector<9x8x128xf32> to vector<1x8x128xf32>
    %19 = vector.shape_cast %18 : vector<1x8x128xf32> to vector<8x128xf32>
    %20 = tpu.weird %19 : vector<8x128xf32> -> vector<8x128xi1>
    %cst_9 = arith.constant dense<true> : vector<8x128xi1>
    %21 = arith.xori %20, %cst_9 : vector<8x128xi1>
    %22 = vector.extract_strided_slice %11 {offsets = [2, 0, 0], sizes = [1, 8, 128], strides = [1, 1, 1]} : vector<9x8x128xf32> to vector<1x8x128xf32>
    %23 = vector.shape_cast %22 : vector<1x8x128xf32> to vector<8x128xf32>
    %24 = tpu.weird %23 : vector<8x128xf32> -> vector<8x128xi1>
    %cst_10 = arith.constant dense<true> : vector<8x128xi1>
    %25 = arith.xori %24, %cst_10 : vector<8x128xi1>
    %26 = arith.andi %21, %25 : vector<8x128xi1>
    %27 = vector.extract_strided_slice %11 {offsets = [3, 0, 0], sizes = [1, 8, 128], strides = [1, 1, 1]} : vector<9x8x128xf32> to vector<1x8x128xf32>
    %28 = vector.shape_cast %27 : vector<1x8x128xf32> to vector<8x128xf32>
    %29 = tpu.weird %28 : vector<8x128xf32> -> vector<8x128xi1>
    %cst_11 = arith.constant dense<true> : vector<8x128xi1>
    %30 = arith.xori %29, %cst_11 : vector<8x128xi1>
    %31 = arith.andi %26, %30 : vector<8x128xi1>
    %32 = vector.extract_strided_slice %11 {offsets = [4, 0, 0], sizes = [1, 8, 128], strides = [1, 1, 1]} : vector<9x8x128xf32> to vector<1x8x128xf32>
    %33 = vector.shape_cast %32 : vector<1x8x128xf32> to vector<8x128xf32>
    %34 = tpu.weird %33 : vector<8x128xf32> -> vector<8x128xi1>
    %cst_12 = arith.constant dense<true> : vector<8x128xi1>
    %35 = arith.xori %34, %cst_12 : vector<8x128xi1>
    %36 = arith.andi %31, %35 : vector<8x128xi1>
    %37 = vector.extract_strided_slice %11 {offsets = [7, 0, 0], sizes = [1, 8, 128], strides = [1, 1, 1]} : vector<9x8x128xf32> to vector<1x8x128xf32>
    %38 = vector.shape_cast %37 : vector<1x8x128xf32> to vector<8x128xf32>
    %39 = tpu.weird %38 : vector<8x128xf32> -> vector<8x128xi1>
    %cst_13 = arith.constant dense<true> : vector<8x128xi1>
    %40 = arith.xori %39, %cst_13 : vector<8x128xi1>
    %41 = vector.extract_strided_slice %11 {offsets = [8, 0, 0], sizes = [1, 8, 128], strides = [1, 1, 1]} : vector<9x8x128xf32> to vector<1x8x128xf32>
    %42 = vector.shape_cast %41 : vector<1x8x128xf32> to vector<8x128xf32>
    %43 = tpu.weird %42 : vector<8x128xf32> -> vector<8x128xi1>
    %cst_14 = arith.constant dense<true> : vector<8x128xi1>
    %44 = arith.xori %43, %cst_14 : vector<8x128xi1>
    %45 = arith.andi %40, %44 : vector<8x128xi1>
    %46 = vector.extract_strided_slice %8 {offsets = [0, 0, 0], sizes = [1, 8, 128], strides = [1, 1, 1]} : vector<8x8x128xf32> to vector<1x8x128xf32>
    %47 = vector.shape_cast %46 : vector<1x8x128xf32> to vector<8x128xf32>
    %48 = vector.extract_strided_slice %8 {offsets = [1, 0, 0], sizes = [1, 8, 128], strides = [1, 1, 1]} : vector<8x8x128xf32> to vector<1x8x128xf32>
    %49 = vector.shape_cast %48 : vector<1x8x128xf32> to vector<8x128xf32>
    %cst_15 = arith.constant 0.000000e+00 : f32
    %50 = vector.broadcast %cst_15 : f32 to vector<8x128xf32>
    %51 = arith.cmpf ogt, %13, %50 : vector<8x128xf32>
    %cst_16 = arith.constant 1.000000e+00 : f32
    %52 = vector.broadcast %cst_16 : f32 to vector<8x128xf32>
    %53 = arith.select %51, %52, %13 : vector<8x128xi1>, vector<8x128xf32>
    %cst_17 = arith.constant 0.000000e+00 : f32
    %54 = vector.broadcast %cst_17 : f32 to vector<8x128xf32>
    %55 = arith.cmpf oeq, %53, %54 : vector<8x128xf32>
    %cst_18 = arith.constant -1.500000e+01 : f32
    %56 = vector.broadcast %cst_18 : f32 to vector<8x128xf32>
    %57 = arith.cmpf olt, %49, %56 : vector<8x128xf32>
    %58 = arith.andi %55, %57 : vector<8x128xi1>
    %cst_19 = arith.constant -1.500000e+01 : f32
    %59 = vector.broadcast %cst_19 : f32 to vector<8x128xf32>
    %60 = arith.select %58, %59, %49 : vector<8x128xi1>, vector<8x128xf32>
    %61 = math.absf %60 : vector<8x128xf32>
    %cst_20 = arith.constant 0.000000e+00 : f32
    %62 = vector.broadcast %cst_20 : f32 to vector<8x128xf32>
    %63 = arith.subf %62, %61 : vector<8x128xf32>
    %64 = math.exp %63 : vector<8x128xf32>
    %cst_21 = arith.constant 0.000000e+00 : f32
    %65 = vector.broadcast %cst_21 : f32 to vector<8x128xf32>
    %66 = arith.maximumf %60, %65 : vector<8x128xf32>
    %67 = arith.mulf %60, %53 : vector<8x128xf32>
    %68 = arith.subf %66, %67 : vector<8x128xf32>
    %69 = math.log1p %64 : vector<8x128xf32>
    %70 = arith.addf %68, %69 : vector<8x128xf32>
    %cst_22 = arith.constant 1.000000e+00 : f32
    %71 = vector.broadcast %cst_22 : f32 to vector<8x128xf32>
    %72 = arith.addf %71, %64 : vector<8x128xf32>
    %73 = tpu.reciprocal %72 {approx = true} : vector<8x128xf32> -> vector<8x128xf32>
    %cst_23 = arith.constant 0.000000e+00 : f32
    %74 = vector.broadcast %cst_23 : f32 to vector<8x128xf32>
    %75 = arith.cmpf oge, %60, %74 : vector<8x128xf32>
    %76 = arith.mulf %64, %73 : vector<8x128xf32>
    %77 = arith.select %75, %73, %76 : vector<8x128xi1>, vector<8x128xf32>
    %78 = arith.mulf %77, %53 : vector<8x128xf32>
    %cst_24 = arith.constant 1.000000e+00 : f32
    %79 = vector.broadcast %cst_24 : f32 to vector<8x128xf32>
    %80 = arith.subf %79, %77 : vector<8x128xf32>
    %cst_25 = arith.constant 1.000000e+00 : f32
    %81 = vector.broadcast %cst_25 : f32 to vector<8x128xf32>
    %82 = arith.subf %81, %53 : vector<8x128xf32>
    %83 = arith.mulf %80, %82 : vector<8x128xf32>
    %84 = arith.addf %78, %83 : vector<8x128xf32>
    %cst_26 = arith.constant 1.000000e+00 : f32
    %85 = vector.broadcast %cst_26 : f32 to vector<8x128xf32>
    %86 = arith.subf %85, %84 : vector<8x128xf32>
    %cst_27 = arith.constant 5.000000e-01 : f32
    %87 = vector.broadcast %cst_27 : f32 to vector<8x128xf32>
    %88 = arith.mulf %87, %86 : vector<8x128xf32>
    %89 = arith.mulf %88, %70 : vector<8x128xf32>
    %90 = arith.cmpf one, %53, %13 : vector<8x128xf32>
    %91 = arith.mulf %89, %13 : vector<8x128xf32>
    %92 = arith.select %90, %91, %89 : vector<8x128xi1>, vector<8x128xf32>
    %cst_28 = arith.constant 5.000000e+00 : f32
    %93 = vector.broadcast %cst_28 : f32 to vector<8x128xf32>
    %94 = arith.cmpf ogt, %92, %93 : vector<8x128xf32>
    %cst_29 = arith.constant -4.000000e+00 : f32
    %95 = vector.broadcast %cst_29 : f32 to vector<8x128xf32>
    %96 = arith.addf %95, %92 : vector<8x128xf32>
    %cst_30 = arith.constant 9.99999993E-9 : f32
    %97 = vector.broadcast %cst_30 : f32 to vector<8x128xf32>
    %98 = arith.maximumf %96, %97 : vector<8x128xf32>
    %99 = math.log %98 : vector<8x128xf32>
    %cst_31 = arith.constant 5.000000e+00 : f32
    %100 = vector.broadcast %cst_31 : f32 to vector<8x128xf32>
    %101 = arith.addf %100, %99 : vector<8x128xf32>
    %102 = arith.select %94, %101, %92 : vector<8x128xi1>, vector<8x128xf32>
    %cst_32 = arith.constant 0.000000e+00 : f32
    %103 = vector.broadcast %cst_32 : f32 to vector<8x128xf32>
    %104 = arith.select %15, %102, %103 : vector<8x128xi1>, vector<8x128xf32>
    %cst_33 = arith.constant 0.333333343 : f32
    %105 = vector.broadcast %cst_33 : f32 to vector<8x128xf32>
    %106 = arith.mulf %47, %105 : vector<8x128xf32>
    %107 = math.tanh %106 : vector<8x128xf32>
    %cst_34 = arith.constant 3.000000e+00 : f32
    %108 = vector.broadcast %cst_34 : f32 to vector<8x128xf32>
    %109 = arith.mulf %108, %107 : vector<8x128xf32>
    %cst_35 = arith.constant 5.000000e-01 : f32
    %110 = vector.broadcast %cst_35 : f32 to vector<8x128xf32>
    %111 = arith.mulf %110, %102 : vector<8x128xf32>
    %cst_36 = arith.constant 0.000000e+00 : f32
    %112 = vector.broadcast %cst_36 : f32 to vector<8x128xf32>
    %113 = arith.subf %112, %109 : vector<8x128xf32>
    %114 = math.exp %113 : vector<8x128xf32>
    %115 = arith.mulf %111, %114 : vector<8x128xf32>
    %cst_37 = arith.constant 5.000000e-01 : f32
    %116 = vector.broadcast %cst_37 : f32 to vector<8x128xf32>
    %117 = arith.mulf %116, %109 : vector<8x128xf32>
    %118 = arith.addf %115, %117 : vector<8x128xf32>
    %cst_38 = arith.constant 0.000000e+00 : f32
    %119 = vector.broadcast %cst_38 : f32 to vector<8x128xf32>
    %120 = arith.select %17, %118, %119 : vector<8x128xi1>, vector<8x128xf32>
    %cst_39 = arith.constant 5.000000e-01 : f32
    %121 = vector.broadcast %cst_39 : f32 to vector<8x128xf32>
    %122 = arith.mulf %121, %109 : vector<8x128xf32>
    %cst_40 = arith.constant 0.69313997 : f32
    %123 = vector.broadcast %cst_40 : f32 to vector<8x128xf32>
    %124 = arith.addf %122, %123 : vector<8x128xf32>
    %cst_41 = arith.constant 0.000000e+00 : f32
    %125 = vector.broadcast %cst_41 : f32 to vector<8x128xf32>
    %126 = arith.subf %125, %124 : vector<8x128xf32>
    %127 = math.exp %126 : vector<8x128xf32>
    %128 = vector.extract_strided_slice %8 {offsets = [6, 0, 0], sizes = [1, 8, 128], strides = [1, 1, 1]} : vector<8x8x128xf32> to vector<1x8x128xf32>
    %129 = vector.shape_cast %128 : vector<1x8x128xf32> to vector<8x128xf32>
    %cst_42 = arith.constant 0.000000e+00 : f32
    %130 = vector.broadcast %cst_42 : f32 to vector<8x128xf32>
    %131 = arith.maximumf %129, %130 : vector<8x128xf32>
    %132 = math.absf %129 : vector<8x128xf32>
    %cst_43 = arith.constant 0.000000e+00 : f32
    %133 = vector.broadcast %cst_43 : f32 to vector<8x128xf32>
    %134 = arith.subf %133, %132 : vector<8x128xf32>
    %135 = math.exp %134 : vector<8x128xf32>
    %136 = math.log1p %135 : vector<8x128xf32>
    %137 = arith.addf %131, %136 : vector<8x128xf32>
    %138 = vector.extract_strided_slice %8 {offsets = [7, 0, 0], sizes = [1, 8, 128], strides = [1, 1, 1]} : vector<8x8x128xf32> to vector<1x8x128xf32>
    %139 = vector.shape_cast %138 : vector<1x8x128xf32> to vector<8x128xf32>
    %cst_44 = arith.constant 0.000000e+00 : f32
    %140 = vector.broadcast %cst_44 : f32 to vector<8x128xf32>
    %141 = arith.maximumf %139, %140 : vector<8x128xf32>
    %142 = math.absf %139 : vector<8x128xf32>
    %cst_45 = arith.constant 0.000000e+00 : f32
    %143 = vector.broadcast %cst_45 : f32 to vector<8x128xf32>
    %144 = arith.subf %143, %142 : vector<8x128xf32>
    %145 = math.exp %144 : vector<8x128xf32>
    %146 = math.log1p %145 : vector<8x128xf32>
    %147 = arith.addf %141, %146 : vector<8x128xf32>
    %cst_46 = arith.constant 0.000000e+00 : f32
    %148 = vector.broadcast %cst_46 : f32 to vector<8x128xf32>
    %149 = vector.extract_strided_slice %8 {offsets = [2, 0, 0], sizes = [1, 8, 128], strides = [1, 1, 1]} : vector<8x8x128xf32> to vector<1x8x128xf32>
    %150 = vector.shape_cast %149 : vector<1x8x128xf32> to vector<8x128xf32>
    %151 = vector.extract_strided_slice %11 {offsets = [1, 0, 0], sizes = [1, 8, 128], strides = [1, 1, 1]} : vector<9x8x128xf32> to vector<1x8x128xf32>
    %152 = vector.shape_cast %151 : vector<1x8x128xf32> to vector<8x128xf32>
    %153 = arith.subf %150, %152 : vector<8x128xf32>
    %154 = vector.extract_strided_slice %8 {offsets = [3, 0, 0], sizes = [1, 8, 128], strides = [1, 1, 1]} : vector<8x8x128xf32> to vector<1x8x128xf32>
    %155 = vector.shape_cast %154 : vector<1x8x128xf32> to vector<8x128xf32>
    %156 = vector.extract_strided_slice %11 {offsets = [2, 0, 0], sizes = [1, 8, 128], strides = [1, 1, 1]} : vector<9x8x128xf32> to vector<1x8x128xf32>
    %157 = vector.shape_cast %156 : vector<1x8x128xf32> to vector<8x128xf32>
    %158 = arith.subf %155, %157 : vector<8x128xf32>
    %159 = vector.extract_strided_slice %11 {offsets = [5, 0, 0], sizes = [1, 8, 128], strides = [1, 1, 1]} : vector<9x8x128xf32> to vector<1x8x128xf32>
    %160 = vector.shape_cast %159 : vector<1x8x128xf32> to vector<8x128xf32>
    %161 = arith.cmpf one, %160, %160 : vector<8x128xf32>
    %cst_47 = arith.constant 0.000000e+00 : f32
    %162 = vector.broadcast %cst_47 : f32 to vector<8x128xf32>
    %163 = arith.select %161, %162, %160 : vector<8x128xi1>, vector<8x128xf32>
    %164 = arith.mulf %153, %153 : vector<8x128xf32>
    %165 = arith.mulf %158, %158 : vector<8x128xf32>
    %166 = arith.addf %164, %165 : vector<8x128xf32>
    %167 = arith.mulf %163, %163 : vector<8x128xf32>
    %168 = arith.addf %166, %167 : vector<8x128xf32>
    %169 = math.sqrt %168 : vector<8x128xf32>
    %170 = vector.extract_strided_slice %11 {offsets = [7, 0, 0], sizes = [1, 8, 128], strides = [1, 1, 1]} : vector<9x8x128xf32> to vector<1x8x128xf32>
    %171 = vector.shape_cast %170 : vector<1x8x128xf32> to vector<8x128xf32>
    %172 = arith.cmpf one, %171, %171 : vector<8x128xf32>
    %173 = arith.select %172, %137, %171 : vector<8x128xi1>, vector<8x128xf32>
    %cst_48 = arith.constant 1.000000e-01 : f32
    %174 = vector.broadcast %cst_48 : f32 to vector<8x128xf32>
    %175 = arith.maximumf %173, %174 : vector<8x128xf32>
    %176 = tpu.reciprocal %175 {approx = true} : vector<8x128xf32> -> vector<8x128xf32>
    %177 = arith.mulf %169, %176 : vector<8x128xf32>
    %cst_49 = arith.constant 5.000000e+00 : f32
    %178 = vector.broadcast %cst_49 : f32 to vector<8x128xf32>
    %179 = arith.cmpf ogt, %177, %178 : vector<8x128xf32>
    %cst_50 = arith.constant -4.000000e+00 : f32
    %180 = vector.broadcast %cst_50 : f32 to vector<8x128xf32>
    %181 = arith.addf %180, %177 : vector<8x128xf32>
    %cst_51 = arith.constant 9.99999993E-9 : f32
    %182 = vector.broadcast %cst_51 : f32 to vector<8x128xf32>
    %183 = arith.maximumf %181, %182 : vector<8x128xf32>
    %184 = math.log %183 : vector<8x128xf32>
    %cst_52 = arith.constant 5.000000e+00 : f32
    %185 = vector.broadcast %cst_52 : f32 to vector<8x128xf32>
    %186 = arith.addf %185, %184 : vector<8x128xf32>
    %187 = arith.select %179, %186, %177 : vector<8x128xi1>, vector<8x128xf32>
    %188 = arith.mulf %187, %127 : vector<8x128xf32>
    %189 = arith.addf %188, %124 : vector<8x128xf32>
    %cst_53 = arith.constant 0.000000e+00 : f32
    %190 = vector.broadcast %cst_53 : f32 to vector<8x128xf32>
    %191 = arith.select %36, %189, %190 : vector<8x128xi1>, vector<8x128xf32>
    %192 = arith.addf %148, %191 : vector<8x128xf32>
    %193 = vector.extract_strided_slice %8 {offsets = [4, 0, 0], sizes = [1, 8, 128], strides = [1, 1, 1]} : vector<8x8x128xf32> to vector<1x8x128xf32>
    %194 = vector.shape_cast %193 : vector<1x8x128xf32> to vector<8x128xf32>
    %195 = vector.extract_strided_slice %11 {offsets = [3, 0, 0], sizes = [1, 8, 128], strides = [1, 1, 1]} : vector<9x8x128xf32> to vector<1x8x128xf32>
    %196 = vector.shape_cast %195 : vector<1x8x128xf32> to vector<8x128xf32>
    %197 = arith.subf %194, %196 : vector<8x128xf32>
    %198 = vector.extract_strided_slice %8 {offsets = [5, 0, 0], sizes = [1, 8, 128], strides = [1, 1, 1]} : vector<8x8x128xf32> to vector<1x8x128xf32>
    %199 = vector.shape_cast %198 : vector<1x8x128xf32> to vector<8x128xf32>
    %200 = vector.extract_strided_slice %11 {offsets = [4, 0, 0], sizes = [1, 8, 128], strides = [1, 1, 1]} : vector<9x8x128xf32> to vector<1x8x128xf32>
    %201 = vector.shape_cast %200 : vector<1x8x128xf32> to vector<8x128xf32>
    %202 = arith.subf %199, %201 : vector<8x128xf32>
    %203 = vector.extract_strided_slice %11 {offsets = [6, 0, 0], sizes = [1, 8, 128], strides = [1, 1, 1]} : vector<9x8x128xf32> to vector<1x8x128xf32>
    %204 = vector.shape_cast %203 : vector<1x8x128xf32> to vector<8x128xf32>
    %205 = arith.cmpf one, %204, %204 : vector<8x128xf32>
    %cst_54 = arith.constant 0.000000e+00 : f32
    %206 = vector.broadcast %cst_54 : f32 to vector<8x128xf32>
    %207 = arith.select %205, %206, %204 : vector<8x128xi1>, vector<8x128xf32>
    %208 = arith.mulf %197, %197 : vector<8x128xf32>
    %209 = arith.mulf %202, %202 : vector<8x128xf32>
    %210 = arith.addf %208, %209 : vector<8x128xf32>
    %211 = arith.mulf %207, %207 : vector<8x128xf32>
    %212 = arith.addf %210, %211 : vector<8x128xf32>
    %213 = math.sqrt %212 : vector<8x128xf32>
    %214 = vector.extract_strided_slice %11 {offsets = [8, 0, 0], sizes = [1, 8, 128], strides = [1, 1, 1]} : vector<9x8x128xf32> to vector<1x8x128xf32>
    %215 = vector.shape_cast %214 : vector<1x8x128xf32> to vector<8x128xf32>
    %216 = arith.cmpf one, %215, %215 : vector<8x128xf32>
    %217 = arith.select %216, %147, %215 : vector<8x128xi1>, vector<8x128xf32>
    %cst_55 = arith.constant 1.000000e-01 : f32
    %218 = vector.broadcast %cst_55 : f32 to vector<8x128xf32>
    %219 = arith.maximumf %217, %218 : vector<8x128xf32>
    %220 = tpu.reciprocal %219 {approx = true} : vector<8x128xf32> -> vector<8x128xf32>
    %221 = arith.mulf %213, %220 : vector<8x128xf32>
    %cst_56 = arith.constant 5.000000e+00 : f32
    %222 = vector.broadcast %cst_56 : f32 to vector<8x128xf32>
    %223 = arith.cmpf ogt, %221, %222 : vector<8x128xf32>
    %cst_57 = arith.constant -4.000000e+00 : f32
    %224 = vector.broadcast %cst_57 : f32 to vector<8x128xf32>
    %225 = arith.addf %224, %221 : vector<8x128xf32>
    %cst_58 = arith.constant 9.99999993E-9 : f32
    %226 = vector.broadcast %cst_58 : f32 to vector<8x128xf32>
    %227 = arith.maximumf %225, %226 : vector<8x128xf32>
    %228 = math.log %227 : vector<8x128xf32>
    %cst_59 = arith.constant 5.000000e+00 : f32
    %229 = vector.broadcast %cst_59 : f32 to vector<8x128xf32>
    %230 = arith.addf %229, %228 : vector<8x128xf32>
    %231 = arith.select %223, %230, %221 : vector<8x128xi1>, vector<8x128xf32>
    %232 = arith.mulf %231, %127 : vector<8x128xf32>
    %233 = arith.addf %232, %124 : vector<8x128xf32>
    %cst_60 = arith.constant 0.000000e+00 : f32
    %234 = vector.broadcast %cst_60 : f32 to vector<8x128xf32>
    %235 = arith.select %36, %233, %234 : vector<8x128xi1>, vector<8x128xf32>
    %236 = arith.addf %192, %235 : vector<8x128xf32>
    %cst_61 = arith.constant 0.000000e+00 : f32
    %237 = vector.broadcast %cst_61 : f32 to vector<8x128xf32>
    %238 = vector.extract_strided_slice %11 {offsets = [7, 0, 0], sizes = [1, 8, 128], strides = [1, 1, 1]} : vector<9x8x128xf32> to vector<1x8x128xf32>
    %239 = vector.shape_cast %238 : vector<1x8x128xf32> to vector<8x128xf32>
    %240 = arith.subf %137, %239 : vector<8x128xf32>
    %241 = math.absf %240 : vector<8x128xf32>
    %cst_62 = arith.constant 1.000000e-01 : f32
    %242 = vector.broadcast %cst_62 : f32 to vector<8x128xf32>
    %243 = arith.addf %242, %239 : vector<8x128xf32>
    %244 = tpu.reciprocal %243 {approx = true} : vector<8x128xf32> -> vector<8x128xf32>
    %245 = arith.mulf %241, %244 : vector<8x128xf32>
    %cst_63 = arith.constant 5.000000e+00 : f32
    %246 = vector.broadcast %cst_63 : f32 to vector<8x128xf32>
    %247 = arith.cmpf ogt, %245, %246 : vector<8x128xf32>
    %cst_64 = arith.constant -4.000000e+00 : f32
    %248 = vector.broadcast %cst_64 : f32 to vector<8x128xf32>
    %249 = arith.addf %248, %245 : vector<8x128xf32>
    %cst_65 = arith.constant 9.99999993E-9 : f32
    %250 = vector.broadcast %cst_65 : f32 to vector<8x128xf32>
    %251 = arith.maximumf %249, %250 : vector<8x128xf32>
    %252 = math.log %251 : vector<8x128xf32>
    %cst_66 = arith.constant 5.000000e+00 : f32
    %253 = vector.broadcast %cst_66 : f32 to vector<8x128xf32>
    %254 = arith.addf %253, %252 : vector<8x128xf32>
    %255 = arith.select %247, %254, %245 : vector<8x128xi1>, vector<8x128xf32>
    %cst_67 = arith.constant 0.000000e+00 : f32
    %256 = vector.broadcast %cst_67 : f32 to vector<8x128xf32>
    %257 = arith.select %45, %255, %256 : vector<8x128xi1>, vector<8x128xf32>
    %258 = arith.addf %237, %257 : vector<8x128xf32>
    %259 = vector.extract_strided_slice %11 {offsets = [8, 0, 0], sizes = [1, 8, 128], strides = [1, 1, 1]} : vector<9x8x128xf32> to vector<1x8x128xf32>
    %260 = vector.shape_cast %259 : vector<1x8x128xf32> to vector<8x128xf32>
    %261 = arith.subf %147, %260 : vector<8x128xf32>
    %262 = math.absf %261 : vector<8x128xf32>
    %cst_68 = arith.constant 1.000000e-01 : f32
    %263 = vector.broadcast %cst_68 : f32 to vector<8x128xf32>
    %264 = arith.addf %263, %260 : vector<8x128xf32>
    %265 = tpu.reciprocal %264 {approx = true} : vector<8x128xf32> -> vector<8x128xf32>
    %266 = arith.mulf %262, %265 : vector<8x128xf32>
    %cst_69 = arith.constant 5.000000e+00 : f32
    %267 = vector.broadcast %cst_69 : f32 to vector<8x128xf32>
    %268 = arith.cmpf ogt, %266, %267 : vector<8x128xf32>
    %cst_70 = arith.constant -4.000000e+00 : f32
    %269 = vector.broadcast %cst_70 : f32 to vector<8x128xf32>
    %270 = arith.addf %269, %266 : vector<8x128xf32>
    %cst_71 = arith.constant 9.99999993E-9 : f32
    %271 = vector.broadcast %cst_71 : f32 to vector<8x128xf32>
    %272 = arith.maximumf %270, %271 : vector<8x128xf32>
    %273 = math.log %272 : vector<8x128xf32>
    %cst_72 = arith.constant 5.000000e+00 : f32
    %274 = vector.broadcast %cst_72 : f32 to vector<8x128xf32>
    %275 = arith.addf %274, %273 : vector<8x128xf32>
    %276 = arith.select %268, %275, %266 : vector<8x128xi1>, vector<8x128xf32>
    %cst_73 = arith.constant 0.000000e+00 : f32
    %277 = vector.broadcast %cst_73 : f32 to vector<8x128xf32>
    %278 = arith.select %45, %276, %277 : vector<8x128xi1>, vector<8x128xf32>
    %279 = arith.addf %258, %278 : vector<8x128xf32>
    %280 = arith.addf %3, %104 : vector<8x128xf32>
    %281 = arith.addf %3, %120 : vector<8x128xf32>
    %282 = arith.addf %3, %236 : vector<8x128xf32>
    %283 = arith.addf %3, %279 : vector<8x128xf32>
    %c1_i32 = arith.constant 1 : i32
    %cst_74 = arith.constant dense<0.000000e+00> : vector<128xf32>
    %284 = vector.multi_reduction <add>, %280, %cst_74 [0] : vector<8x128xf32> to vector<128xf32>
    %285 = vector.shape_cast %284 : vector<128xf32> to vector<1x128xf32>
    %cst_75 = arith.constant dense<0.000000e+00> : vector<128xf32>
    %286 = vector.multi_reduction <add>, %281, %cst_75 [0] : vector<8x128xf32> to vector<128xf32>
    %287 = vector.shape_cast %286 : vector<128xf32> to vector<1x128xf32>
    %cst_76 = arith.constant dense<0.000000e+00> : vector<128xf32>
    %288 = vector.multi_reduction <add>, %282, %cst_76 [0] : vector<8x128xf32> to vector<128xf32>
    %289 = vector.shape_cast %288 : vector<128xf32> to vector<1x128xf32>
    %cst_77 = arith.constant dense<0.000000e+00> : vector<128xf32>
    %290 = vector.multi_reduction <add>, %283, %cst_77 [0] : vector<8x128xf32> to vector<128xf32>
    %291 = vector.shape_cast %290 : vector<128xf32> to vector<1x128xf32>
    %292 = tpu.concatenate %285, %287, %289, %291 in 0 : vector<1x128xf32>, vector<1x128xf32>, vector<1x128xf32>, vector<1x128xf32> -> vector<4x128xf32>
    %c0_78 = arith.constant 0 : index
    %c0_79 = arith.constant 0 : index
    %c0_80 = arith.constant 0 : index
    %293 = vector.load %arg4[%c0_78, %c0_79, %c0_80] : memref<1x4x128xf32, #tpu.memory_space<vmem>>, vector<1x4x128xf32>
    %294 = vector.shape_cast %293 : vector<1x4x128xf32> to vector<4x128xf32>
    %295 = arith.addf %294, %292 : vector<4x128xf32>
    %c0_81 = arith.constant 0 : index
    %c0_82 = arith.constant 0 : index
    %c0_83 = arith.constant 0 : index
    %296 = vector.load %arg4[%c0_81, %c0_82, %c0_83] : memref<1x4x128xf32, #tpu.memory_space<vmem>>, vector<1x4x128xf32>
    %297 = vector.shape_cast %296 : vector<1x4x128xf32> to vector<4x128xf32>
    %298 = vector.shape_cast %295 : vector<4x128xf32> to vector<1x4x128xf32>
    tpu.vector_store %arg4[%c0_81, %c0_82, %c0_83], %298 {strides = array<i32>} : memref<1x4x128xf32, #tpu.memory_space<vmem>>, vector<1x4x128xf32>,
    return
  }
  func.func @transform_0(%arg0: i32, %arg1: i32) -> (i32, i32, i32, i32) {
    %c0_i32 = arith.constant 0 : i32
    %c0_i32_0 = arith.constant 0 : i32
    %c0_i32_1 = arith.constant 0 : i32
    return %arg0, %c0_i32, %arg1, %c0_i32_0 : i32, i32, i32, i32
  }
  func.func @transform_1(%arg0: i32, %arg1: i32) -> (i32, i32, i32, i32) {
    %c0_i32 = arith.constant 0 : i32
    %c0_i32_0 = arith.constant 0 : i32
    %c0_i32_1 = arith.constant 0 : i32
    return %arg0, %c0_i32, %arg1, %c0_i32_0 : i32, i32, i32, i32
  }
  func.func @transform_2(%arg0: i32, %arg1: i32) -> (i32, i32, i32) {
    %c0_i32 = arith.constant 0 : i32
    %c0_i32_0 = arith.constant 0 : i32
    %c0_i32_1 = arith.constant 0 : i32
    return %arg0, %c0_i32, %c0_i32_0 : i32, i32, i32
  }
}

</mosaic_0001>

<bundles_post_ra>
// kernel: tpu_custom_call.1
= control target key start
LH: loop header
LB: loop body
LE: loop exit
PB: predicated region body
PF: predicated region fallthrough
CT: control target
= control target key end

     0   :  { %7 = vsyncpa [#allocation3], 0  ;;  %s1325_s0 = inlined_call_operand.hbm [shape: f32[8,8,8,128], index: 0, kind: input, shape index: {}]   ;;  %s1326_s1 = inlined_call_operand.hbm [shape: f32[8,9,8,128], index: 1, kind: input, shape index: {}]   ;;  %s1327_s2 = inlined_call_operand.hbm [shape: f32[8,4,128], index: 2, kind: output, shape index: {}]  }
   0x1   :  { %9 = vsyncpa [#allocation3 + $0x1], 0 }
   0x2   :  { %10 = vsyncpa [#allocation6], 0 }
   0x3   :  { %12 = vsyncpa [#allocation6 + $0x1], 0 }
   0x4   :  { %13 = vsyncpa [#allocation4], 0 }
   0x5   :  { %15 = vsyncpa [#allocation4 + $0x1], 0  ;;  %s901_s9 = smov 0   ;;  %s903_s10 = smov 0  }
   0x6   :  { %s905_s11 = smov 0   ;;  %s907_s12 = smov 0  }
   0x7   :  { %s909_s13 = smov 0   ;;  %s911_s14 = smov 0  }
   0x8 LB: > { %s599_s15 = sadd.s32 4294967295, %s877_s14   ;;  %s600_s16 = sadd.s32 4294967294, %s877_s14   ;;  %s877_s14 = sphi %s911_s14, %s21_s14   ;;  %s873_s13 = sphi %s909_s13, %s1358_s13   ;;  %s869_s12 = sphi %s907_s12, %s1357_s12   ;;  %s865_s11 = sphi %s905_s11, %s1356_s11   ;;  %s861_s10 = sphi %s903_s10, %s1355_s10   ;;  %s857_s9 = sphi %s901_s9, %s1354_s9  }
   0x9   : > { %s33_s17 = sadd.s32 1, %s873_s13  ;;  %s42_s18 = sadd.s32 1, %s865_s11 }
   0xa   : > { %p35_p0 = scmp.ge.s32.totalorder %s33_s17, 8  ;;  %p49_p1 = scmp.ne.s32.totalorder %s865_s11, %s861_s10 }
   0xb   : > { %p50_p2 = scmp.eq.s32.totalorder %s877_s14, 0  ;;  %p55_p3 = scmp.ne.s32.totalorder %s861_s10, %s857_s9 }
   0xc   : > { %s1360_s17 = smov (%p35_p0, %s33_s17), 0  ;;  %p56_p5 = scmp.eq.s32.totalorder %s599_s15, 0 }
   0xd   : > { %p942_p4 = por %p50_p2, %p49_p1  ;;  %s37_s20 = ssub.s32 %s873_s13, %s1360_s17 }
   0xe   : > { %p107_p6 = scmp.eq.s32.totalorder %s599_s15, 7  ;;  %p40_p7 = scmp.eq.s32.totalorder %s37_s20, 0 }
   0xf   : > { %p948_p8 = por %p56_p5, %p55_p3  ;;  %p113_p10 = scmp.eq.s32.totalorder %s600_s16, 7 }
  0x10   : > { %p952_p9 = por %p107_p6, %p49_p1  ;;  %p635_p12 = scmp.lt.s32.totalorder %s877_s14, 8 }
  0x11   : > { %s1331_s21 = scalar_select %p948_p8, 1, 0 }
  0x12   : > { %s1332_s22 = scalar_select %p952_p9, 1, 0 }
  0x13   : > { %s957_s23 = scalar_select %p40_p7, %s865_s11, %s42_s18  }
  0x14   : > { %p959_p11 = por %p113_p10, %p55_p3  ;;  %s965_s25 = sand.u32 1, %s865_s11  }
  0x15   : > { %s603_s26 = sshll.u32 %s965_s25, 6  ;;  %s614_s27 = sshll.u32 %s873_s13, 10 }
  0x16   : > { %s1333_s24 = scalar_select %p959_p11, 1, 0 }
  0x17   : > { %s972_s30 = scalar_lea.hbm %s1325_s0, %s614_s27  ;;  %s137_s3 = scalar_lea.vmem [#allocation2], %s603_s26 }
  0x18   : > { %s145_s4 = sshll.u32 %s137_s3, 4  ;;  %p978_p13 = pnand %p635_p12, %p942_p4  ;;  %s974_s4 = int_to_ptr.vmem [resolvable:$true] %s145_s4 }
  0x19   : > { %s134_s6 = scalar_lea.sflag [#allocation3], %s965_s25  ;;  %s731_s7 = scalar_lea.hbm %s972_s30, 1024 }
  0x1a   : > { %p732_p1 = scmp.ne.s32.totalorder %s972_s30, %s731_s7  ;;  %p733_p2 = pneg %p978_p13 }
  0x1b   : > { %s736_s16 = scalar_lea.hbm %s1325_s0, 8192  ;;  %p737_p4 = scmp.lt.u32.totalorder %s972_s30, %s1325_s0 }
  0x1c   : > { %p734_p3 = pnand %p733_p2, %p732_p1  ;;  %p738_p6 = scmp.lt.u32.totalorder %s736_s16, %s731_s7 }
  0x1d   : > { %p740_p10 = scmp.lt.u32.totalorder %s731_s7, %s972_s30 }
  0x1e   : > { %p735_p5 = pneg %p734_p3  ;;  %p739_p7 = por %p738_p6, %p737_p4 }
  0x20   : > { %p741_p12 = por %p740_p10, %p739_p7 }
  0x22   : > { %p742_p0 = pnand %p741_p12, %p735_p5 }
  0x24   : > { %745 = shalt.err (!%p742_p0)
}
  0x25   : > { %s746_s20 = scalar_lea.vmem %s974_s4, 1024  ;;  %s879_s26 = smov [#allocation2]  }
  0x26   : > { %p747_p1 = scmp.ne.s32.totalorder %s974_s4, %s746_s20  ;;  %s751_s27 = sshll.u32 %s879_s26, 4  ;;  %s752_s27 = int_to_ptr.vmem [resolvable:$false] %s751_s27 }
  0x27   : > { %s753_s28 = scalar_lea.vmem %s752_s27, 2048  ;;  %p754_p9 = scmp.lt.s32.totalorder %s974_s4, %s752_s27 }
  0x28   : > { %p749_p3 = pnand %p747_p1, %p733_p2  ;;  %p755_p4 = scmp.lt.s32.totalorder %s753_s28, %s746_s20 }
  0x2a   : > { %p750_p11 = pneg %p749_p3  ;;  %p756_p6 = por %p755_p4, %p754_p9 }
  0x2c   : > { %p757_p7 = pnand %p756_p6, %p750_p11 }
  0x2e   : > { %760 = shalt.err (!%p757_p7)
}
  0x2f   : > { %s880_s29 = smov 128   ;;  %s881_s3 = smov 8  }
  0x30   : > { %627 = dma.hbm_to_vmem [thread:$0]  (!%p978_p13), %s972_s30, 1024, %s974_s4, %s134_s6, %s880_s29, %s880_s29, %s881_s3  }
  0x31   : > { %p175_p9 = scmp.lt.s32.totalorder %s877_s14, 9  ;;  %s615_s7 = smul.u32 72, %s965_s25 }
  0x32   : > { %p1335_p11 = scmp.ge.s32.totalorder %s877_s14, 1  ;;  %s616_s15 = smul.u32 1152, %s873_s13 }
  0x33   : > { %s159_s20 = scalar_lea.vmem [#allocation5], %s615_s7  ;;  %s156_s30 = scalar_lea.sflag [#allocation6], %s965_s25 }
  0x34   : > { %p1018_p0 = pnand %p1335_p11, %p175_p9  ;;  %s1026_s19 = scalar_lea.hbm %s1326_s1, %s616_s15 }
  0x35   : > { %s167_s26 = sshll.u32 %s159_s20, 4  ;;  %s761_s4 = scalar_lea.hbm %s1026_s19, 1152  ;;  %s1028_s26 = int_to_ptr.vmem [resolvable:$true] %s167_s26 }
  0x36   : > { %p762_p5 = scmp.ne.s32.totalorder %s1026_s19, %s761_s4  ;;  %s766_s28 = scalar_lea.hbm %s1326_s1, 9216 }
  0x37   : > { %p767_p1 = scmp.lt.u32.totalorder %s1026_s19, %s1326_s1  ;;  %p768_p3 = scmp.lt.u32.totalorder %s766_s28, %s761_s4 }
  0x38   : > { %p764_p10 = pnand %p762_p5, %p733_p2  ;;  %p770_p6 = scmp.lt.u32.totalorder %s761_s4, %s1026_s19 }
  0x39   : > { %p769_p4 = por %p768_p3, %p767_p1 }
  0x3a   : > { %p765_p12 = pneg %p764_p10 }
  0x3b   : > { %p771_p7 = por %p770_p6, %p769_p4 }
  0x3d   : > { %p772_p9 = pnand %p771_p7, %p765_p12 }
  0x3f   : > { %775 = shalt.err (!%p772_p9)
}
  0x40   : > { %s776_s7 = scalar_lea.vmem %s1028_s26, 1152  ;;  %s882_s18 = smov [#allocation5]  }
  0x41   : > { %p777_p11 = scmp.ne.s32.totalorder %s1028_s26, %s776_s7  ;;  %s781_s20 = sshll.u32 %s882_s18, 4  ;;  %s782_s20 = int_to_ptr.vmem [resolvable:$false] %s781_s20 }
  0x42   : > { %s783_s6 = scalar_lea.vmem %s782_s20, 2304  ;;  %p784_p8 = scmp.lt.s32.totalorder %s1028_s26, %s782_s20 }
  0x43   : > { %p779_p5 = pnand %p777_p11, %p733_p2  ;;  %p785_p1 = scmp.lt.s32.totalorder %s783_s6, %s776_s7 }
  0x45   : > { %p780_p10 = pneg %p779_p5  ;;  %p786_p3 = por %p785_p1, %p784_p8 }
  0x47   : > { %p787_p4 = pnand %p786_p3, %p780_p10 }
  0x49   : > { %790 = shalt.err (!%p787_p4)
}
  0x4a   : > { %630 = dma.hbm_to_vmem [thread:$0]  (!%p978_p13), %s1026_s19, 1152, %s1028_s26, %s156_s30, %s880_s29, %s880_s29, %s881_s3  }
  0x4b   : > { %179 = sbr.rel (%p1018_p0) target bundleno = 202 (0xca), region = 28  ;;  %s1062_s4 = sand.u32 (!%p1018_p0), 1, %s861_s10  }
  0x4c   : > { %s608_s27 = sshll.u32 (!%p1018_p0), %s1062_s4, 6  ;;  %s182_s28 = scalar_lea.sflag (!%p1018_p0), [#allocation3], %s1062_s4 }
  0x4d   : > { %s1066_s5 = scalar_lea.vmem (!%p1018_p0), [#allocation2], %s608_s27  ;;  %p1337_p8 = scmp.ne.s32.totalorder (!%p1018_p0), %s1331_s21, 0 }
  0x52   : > { %844 = dma.done.wait (%p1337_p8), %s182_s28, 1024  }
  0x53   : > { %846 = vsyncadd (%p1337_p8), %s182_s28, 4294966272  ;;  %s617_s25 = smul.u32 72, %s1062_s4  ;;  %s191_s29 = scalar_lea.sflag [#allocation6], %s1062_s4 }
  0x55   : > { %s1074_s3 = scalar_lea.vmem [#allocation5], %s617_s25 }
  0x56   : > { %848 = dma.done.wait (%p1337_p8), %s191_s29, 1152  }
  0x57   : > { %850 = vsyncadd (%p1337_p8), %s191_s29, 4294966144  ;;  %s609_s8 = sshll.u32 %s1062_s4, 2  ;;  %v883_v0 = vmov 0.0   ;;  %v1085_v1 = vld [vmem:[%s1066_s5 + $0x30] sm:$0xff]  ;;  %v1088_v2 = vld [vmem:[%s1074_s3] sm:$0xff]  ;;  %s611_s21 = sshll.u32 %s869_s12, 6 }
  0x58   : > { %s1081_s19 = scalar_lea.vmem [#allocation7], %s609_s8  ;;  %v1091_v3 = vld [vmem:[%s1066_s5 + $0x38] sm:$0xff]  ;;  %vm243_vm0 = vcmp.gt.f32.partialorder %v1088_v2, 0.0  ;;  %v322_v4 = vand.u32 2147483647, %v1085_v1  ;;  %v226_v7 = vld [vmem:[%s1066_s5 + $0x8] sm:$0xff]  ;;  %s1276_s16 = scalar_lea.hbm %s1327_s2, %s611_s21 }
  0x59   : > { %224 = vst [vmem:[%s1081_s19] sm:$0xf] %v883_v0  ;;  %v337_v5 = vand.u32 2147483647, %v1091_v3  ;;  %v1100_v8 = vsel %vm243_vm0, 1.0, %v1088_v2  ;;  %v227_v11 = vld [vmem:[%s1066_s5 + $0x10] sm:$0xff]  ;;  %v228_v12 = vld [vmem:[%s1066_s5 + $0x18] sm:$0xff] }
  0x5a   : > { %v323_v6 = vsub.f32 0.0, %v322_v4  ;;  %v229_v14 = vld [vmem:[%s1066_s5 + $0x20] sm:$0xff]  ;;  %v1106_v15 = vld [vmem:[%s1074_s3 + $0x8] sm:$0xff]  ;;  %v1109_v16 = vld [vmem:[%s1074_s3 + $0x10] sm:$0xff]  ;;  %vm261_vm1 = vcmp.eq.f32.partialorder %v1100_v8, 0.0  ;;  %vm262_vm2 = vcmp.lt.f32.partialorder %v226_v7, -15.0 }
  0x5b   : > { %v338_v9 = vsub.f32 0.0, %v337_v5  ;;  %v230_v17 = vld [vmem:[%s1066_s5 + $0x28] sm:$0xff]  ;;  %v1114_v18 = vld [vmem:[%s1074_s3 + $0x18] sm:$0xff]  ;;  %v239_v21 = vld [vmem:[%s1074_s3 + $0x30] sm:$0xff]  ;;  %v351_v22 = vsub.f32 %v227_v11, %v1106_v15  ;;  %v352_v23 = vsub.f32 %v228_v12, %v1109_v16  ;;  %v321_v62 = vmax.f32 %v1085_v1, 0.0  ;;  %s494_s26 = sshll.u32 %s1081_s19, 4  ;;  %s1278_s26 = int_to_ptr.vmem [resolvable:$true] %s494_s26 }
  0x5c   : > { %v324_v10 = vmul.f32 1.442695, %v323_v6  ;;  %v1117_v19 = vld [vmem:[%s1074_s3 + $0x20] sm:$0xff]  ;;  %v238_v20 = vld [vmem:[%s1074_s3 + $0x28] sm:$0xff]  ;;  %vm263_vm3 = vmand %vm261_vm1, %vm262_vm2  ;;  %v383_v25 = vsub.f32 %v229_v14, %v1114_v18  ;;  %vm385_vm5 = vcmp.ne.f32.partialorder %v239_v21, %v239_v21  ;;  %v336_v5 = vmax.f32 %v1091_v3, 0.0  ;;  %s481_s7 = scalar_lea.sflag [#allocation4], %s1062_s4 }
  0x5d   : > { %v339_v13 = vmul.f32 1.442695, %v338_v9  ;;  %v1123_v24 = vsel %vm263_vm3, -15.0, %v226_v7  ;;  %v384_v26 = vsub.f32 %v230_v17, %v1117_v19  ;;  %vm353_vm4 = vcmp.ne.f32.partialorder %v238_v20, %v238_v20  ;;  %v225_v34 = vld [vmem:[%s1066_s5] sm:$0xff]  ;;  %s791_s18 = scalar_lea.vmem %s1278_s26, 64  ;;  %p1352_p2 = scmp.ne.s32.totalorder %s1332_s22, 0 }
  0x5e   : > { %689 = vpow2.f32 %v324_v10  ;;  %v265_v27 = vand.u32 2147483647, %v1123_v24  ;;  %v355_v29 = vmul.f32 %v351_v22, %v351_v22  ;;  %v356_v30 = vmul.f32 %v352_v23, %v352_v23  ;;  %v1130_v46 = vld [vmem:[%s1074_s3 + $0x38] sm:$0xff]  ;;  %v1136_v51 = vld [vmem:[%s1074_s3 + $0x40] sm:$0xff]  ;;  %p792_p13 = scmp.ne.s32.totalorder %s1278_s26, %s791_s18  ;;  %s885_s12 = smov [#allocation7]  }
  0x5f   : > { %691 = vpow2.f32 %v339_v13  ;;  %v354_v31 = vsel %vm353_vm4, 0.0, %v238_v20  ;;  %v387_v32 = vmul.f32 %v383_v25, %v383_v25  ;;  %v388_v33 = vmul.f32 %v384_v26, %v384_v26  ;;  %s795_s20 = sshll.u32 %s885_s12, 4  ;;  %s796_s20 = int_to_ptr.vmem [resolvable:$false] %s795_s20 }
  0x60   : > { %v266_v28 = vsub.f32 0.0, %v265_v27  ;;  %v386_v36 = vsel %vm385_vm5, 0.0, %v239_v21  ;;  %v357_v40 = vadd.f32 %v356_v30, %v355_v29  ;;  %v358_v41 = vmul.f32 %v354_v31, %v354_v31  ;;  %p793_p0 = pnand %p792_p13, %p1352_p2  ;;  %s797_s6 = scalar_lea.vmem %s796_s20, 128 }
  0x61   : > { %v306_v42 = vmul.f32 0.33333334, %v225_v34  ;;  %v389_v44 = vadd.f32 %v388_v33, %v387_v32  ;;  %v390_v45 = vmul.f32 %v386_v36, %v386_v36  ;;  %v417_v48 = vadd.f32 0.1, %v1130_v46  ;;  %p798_p6 = scmp.lt.s32.totalorder %s1278_s26, %s796_s20  ;;  %p799_p7 = scmp.lt.s32.totalorder %s797_s6, %s791_s18 }
  0x62   : > { %v267_v35 = vmul.f32 1.442695, %v266_v28  ;;  %v1133_v50 = vadd.f32 %v358_v41, %v357_v40  ;;  %v431_v53 = vadd.f32 0.1, %v1136_v51  ;;  %vm367_vm8 = vcmp.ne.f32.partialorder %v1130_v46, %v1130_v46  ;;  %p794_p12 = pneg %p793_p0 }
  0x63   : > { %v1138_v52 = vadd.f32 %v390_v45, %v389_v44  ;;  %vm399_vm9 = vcmp.ne.f32.partialorder %v1136_v51, %v1136_v51  ;;  %v289_v27 = vsub.f32 1.0, %v1100_v8  ;;  %v269_v40 = vmax.f32 %v1123_v24, 0.0  ;;  %p800_p9 = por %p799_p7, %p798_p6 }
  0x64   : > { %693 = vpow2.f32 %v267_v35  ;;  %vm362_vm10 = vcmp.eq.f32.partialorder %v1133_v50, inf  ;;  %vm364_vm11 = vcmp.eq.f32.partialorder %v1133_v50, 0.0  ;;  %v365_v30 = vand.u32 2147483648, %v1133_v50 }
  0x65   : > { %vm394_vm12 = vcmp.eq.f32.partialorder %v1138_v52, inf  ;;  %vm284_vm13 = vcmp.ge.f32.partialorder %v1123_v24, 0.0  ;;  %vm396_vm14 = vcmp.eq.f32.partialorder %v1138_v52, 0.0  ;;  %vm244_vm1 = vweird.f32 %v1106_v15  ;;  %p801_p11 = pnand %p800_p9, %p794_p12 }
  0x66   : > { %vm246_vm2 = vweird.f32 %v1109_v16  ;;  %vm295_vm3 = vcmp.ne.f32.partialorder %v1100_v8, %v1088_v2  ;;  %vm884_vm4 = vmmov 1  }
  0x67   : > { %vm1209_vm5 = vmxor %vm244_vm1, %vm884_vm4  ;;  %vm252_vm1 = vweird.f32 %v1117_v19 }
  0x68   : > { %v690_v37 = vpop.eup %689 }
  0x69   : > { %v692_v38 = vpop.eup %691  ;;  %v326_v39 = vadd.f32 1.0, %v690_v37  ;;  %v329_v47 = vmul.f32 -0.5, %v690_v37  ;;  %v332_v55 = vand.u32 2147483647, %v690_v37 }
  0x6a   : > { %v341_v43 = vadd.f32 1.0, %v692_v38  ;;  %v344_v49 = vmul.f32 -0.5, %v692_v38  ;;  %v347_v57 = vand.u32 2147483647, %v692_v38 }
  0x6b   : > { %695 = vlog2.f32 %v326_v39  ;;  %v330_v54 = vadd.f32 1.0, %v329_v47  ;;  %vm333_vm6 = vcmp.lt.f32.partialorder %v332_v55, 0.0004427343 }
  0x6c   : > { %697 = vlog2.f32 %v341_v43  ;;  %v345_v56 = vadd.f32 1.0, %v344_v49  ;;  %vm348_vm7 = vcmp.lt.f32.partialorder %v347_v57, 0.0004427343  ;;  %v270_v43 = vmul.f32 %v1123_v24, %v1100_v8 }
  0x6d   : > { %699 = vtanh.f32 %v306_v42  ;;  %v331_v60 = vmul.f32 %v690_v37, %v330_v54  ;;  %v397_v49 = vand.u32 2147483648, %v1138_v52 }
  0x6e   : > { %701 = vrcp.f32 %v417_v48  ;;  %v1143_v58 = vpop.eup %693  ;;  %v346_v63 = vmul.f32 %v692_v38, %v345_v56 }
  0x6f   : > { %703 = vrsqrt.f32 %v1133_v50  ;;  %v272_v59 = vadd.f32 1.0, %v1143_v58  ;;  %v275_v21 = vmul.f32 -0.5, %v1143_v58  ;;  %v278_v41 = vand.u32 2147483647, %v1143_v58 }
  0x70   : > { %705 = vrsqrt.f32 %v1138_v52 }
  0x71   : > { %707 = vrcp.f32 %v431_v53  ;;  %v276_v36 = vadd.f32 1.0, %v275_v21  ;;  %vm1188_vm15 = vcmp.lt.f32.partialorder %v278_v41, 0.0004427343 }
  0x72   : > { %709 = vlog2.f32 %v272_v59 }
  0x73   : > { %711 = vrcp.f32 %v272_v59  ;;  %v277_v55 = vmul.f32 %v1143_v58, %v276_v36 }
  0x75   : > { %v696_v61 = vpop.eup %695 }
  0x76   : > { %v698_v0 = vpop.eup %697  ;;  %v328_v4 = vmul.f32 0.6931472, %v696_v61 }
  0x77   : > { %v343_v6 = vmul.f32 0.6931472, %v698_v0  ;;  %v700_v7 = vpop.eup %699 }
  0x78   : > { %v334_v9 = vsel %vm333_vm6, %v331_v60, %v328_v4  ;;  %v702_v1 = vpop.eup %701  ;;  %v1152_v14 = vmul.f32 3.0, %v700_v7  ;;  %vm1214_vm6 = vmxor %vm246_vm2, %vm884_vm4 }
  0x79   : > { %v335_v10 = vadd.f32 %v334_v9, %v321_v62  ;;  %v349_v11 = vsel %vm348_vm7, %v346_v63, %v343_v6  ;;  %v704_v13 = vpop.eup %703  ;;  %v271_v63 = vsub.f32 %v269_v40, %v270_v43  ;;  %vm255_vm7 = vweird.f32 %v1130_v46 }
  0x7a   : > { %v350_v12 = vadd.f32 %v349_v11, %v336_v5  ;;  %v706_v20 = vpop.eup %705  ;;  %v361_v32 = vmul.f32 %v704_v13, %v1133_v50  ;;  %v1168_v37 = vmul.f32 0.5, %v1152_v14 }
  0x7b   : > { %v368_v3 = vsel %vm367_vm8, %v335_v10, %v1130_v46  ;;  %v415_v17 = vsub.f32 %v335_v10, %v1130_v46  ;;  %v708_v26 = vpop.eup %707  ;;  %v393_v33 = vmul.f32 %v706_v20, %v1138_v52  ;;  %vm257_vm8 = vweird.f32 %v1136_v51 }
  0x7c   : > { %v369_v22 = vmax.f32 %v368_v3, 0.1  ;;  %v400_v23 = vsel %vm399_vm9, %v350_v12, %v1136_v51  ;;  %v429_v25 = vsub.f32 %v350_v12, %v1136_v51  ;;  %v710_v35 = vpop.eup %709  ;;  %v363_v47 = vsel %vm362_vm10, %v1133_v50, %v361_v32  ;;  %vm248_vm9 = vmand %vm1209_vm5, %vm1214_vm6 }
  0x7d   : > { %v401_v28 = vmax.f32 %v400_v23, 0.1  ;;  %v416_v29 = vand.u32 2147483647, %v415_v17  ;;  %v712_v39 = vpop.eup %711  ;;  %v395_v48 = vsel %vm394_vm12, %v1138_v52, %v393_v33  ;;  %v274_v54 = vmul.f32 0.6931472, %v710_v35  ;;  %vm1232_vm12 = vmxor %vm257_vm8, %vm884_vm4 }
  0x7e   : > { %713 = vrcp.f32 %v369_v22  ;;  %v430_v31 = vand.u32 2147483647, %v429_v25  ;;  %v285_v44 = vmul.f32 %v712_v39, %v1143_v58  ;;  %v1194_v61 = vadd.f32 0.69314, %v1168_v37 }
  0x7f   : > { %715 = vrcp.f32 %v401_v28  ;;  %v1165_v34 = vmul.f32 %v702_v1, %v416_v29  ;;  %v366_v62 = vsel %vm364_vm11, %v365_v30, %v363_v47  ;;  %v398_v58 = vsel %vm396_vm14, %v397_v49, %v395_v48  ;;  %vm1227_vm11 = vmxor %vm255_vm7, %vm884_vm4 }
  0x80   : > { %v1171_v38 = vmul.f32 %v708_v26, %v430_v31  ;;  %v286_v56 = vsel %vm284_vm13, %v712_v39, %v285_v44  ;;  %v280_v5 = vsel %vm1188_vm15, %v277_v55, %v274_v54  ;;  %v318_v10 = vsub.f32 0.0, %v1194_v61  ;;  %vm259_vm2 = vmand %vm1227_vm11, %vm1232_vm12 }
  0x81   : > { %v421_v42 = vadd.f32 -4.0, %v1165_v34  ;;  %v287_v59 = vmul.f32 %v286_v56, %v1100_v8  ;;  %v288_v60 = vsub.f32 1.0, %v286_v56  ;;  %v281_v1 = vadd.f32 %v280_v5, %v271_v63 }
  0x82   : > { %v435_v45 = vadd.f32 -4.0, %v1171_v38  ;;  %v319_v20 = vmul.f32 1.442695, %v318_v10  ;;  %v310_v29 = vsub.f32 0.0, %v1152_v14  ;;  %vm249_vm10 = vweird.f32 %v1114_v18 }
  0x83   : > { %v422_v53 = vmax.f32 %v421_v42, 1e-08  ;;  %v290_v0 = vmul.f32 %v289_v27, %v288_v60  ;;  %vm420_vm13 = vcmp.gt.f32.partialorder %v1165_v34, 5.0  ;;  %vm434_vm14 = vcmp.gt.f32.partialorder %v1171_v38, 5.0  ;;  %vm250_vm15 = vmxor %vm249_vm10, %vm884_vm4 }
  0x84   : > { %v436_v24 = vmax.f32 %v435_v45, 1e-08  ;;  %v311_v18 = vmul.f32 1.442695, %v310_v29  ;;  %vm1251_vm7 = vmand %vm248_vm9, %vm250_vm15  ;;  %vm242_vm6 = vcmp.eq.f32.partialorder %v1088_v2, 0.0  ;;  %vm471_vm9 = vcmask 1040384  }
  0x85   : > { %717 = vlog2.f32 %v422_v53  ;;  %v291_v7 = vadd.f32 %v290_v0, %v287_v59  ;;  %vm1256_vm10 = vmxor %vm252_vm1, %vm884_vm4  ;;  %vm475_vm11 = vcmask 1042432  }
  0x86   : > { %719 = vlog2.f32 %v436_v24  ;;  %vm254_vm5 = vmand %vm1251_vm7, %vm1256_vm10 }
  0x87   : > { %v292_v12 = vsub.f32 1.0, %v291_v7 }
  0x88   : > { %v714_v4 = vpop.eup %713 }
  0x89   : > { %v716_v6 = vpop.eup %715  ;;  %v371_v9 = vmul.f32 %v714_v4, %v366_v62  ;;  %v293_v3 = vmul.f32 0.5, %v292_v12 }
  0x8a   : > { %v403_v11 = vmul.f32 %v716_v6, %v398_v58 }
  0x8b   : > { %v373_v50 = vadd.f32 -4.0, %v371_v9  ;;  %v294_v22 = vmul.f32 %v293_v3, %v281_v1 }
  0x8c   : > { %v405_v13 = vadd.f32 -4.0, %v403_v11  ;;  %vm404_vm8 = vcmp.gt.f32.partialorder %v403_v11, 5.0 }
  0x8d   : > { %v374_v17 = vmax.f32 %v373_v50, 1e-08  ;;  %v296_v25 = vmul.f32 %v294_v22, %v1088_v2 }
  0x8e   : > { %v406_v21 = vmax.f32 %v405_v13, 1e-08 }
  0x8f   : > { %v718_v52 = vpop.eup %717  ;;  %721 = vlog2.f32 %v374_v17  ;;  %v297_v27 = vsel %vm295_vm3, %v296_v25, %v294_v22  ;;  %vm372_vm3 = vcmp.gt.f32.partialorder %v371_v9, 5.0 }
  0x90   : > { %v720_v23 = vpop.eup %719  ;;  %723 = vlog2.f32 %v406_v21  ;;  %v424_v16 = vmul.f32 0.6931472, %v718_v52  ;;  %v299_v8 = vadd.f32 -4.0, %v297_v27  ;;  %vm298_vm4 = vcmp.gt.f32.partialorder %v297_v27, 5.0 }
  0x91   : > { %725 = vpow2.f32 %v319_v20  ;;  %v438_v28 = vmul.f32 0.6931472, %v720_v23 }
  0x92   : > { %v300_v30 = vmax.f32 %v299_v8, 1e-08  ;;  %v425_v32 = vadd.f32 5.0, %v424_v16 }
  0x93   : > { %v439_v46 = vadd.f32 5.0, %v438_v28 }
  0x94   : > { %727 = vlog2.f32 %v300_v30  ;;  %v426_v39 = vsel %vm420_vm13, %v425_v32, %v1165_v34  ;;  %v477_v30 = vld [vmem:[%s1081_s19] sm:$0xf] }
  0x95   : > { %v440_v40 = vsel %vm434_vm14, %v439_v46, %v1171_v38  ;;  %729 = vpow2.f32 %v311_v18  ;;  %v427_v44 = vsel %vm259_vm2, %v426_v39, 0.0 }
  0x96   : > { %v441_v45 = vsel %vm259_vm2, %v440_v40, 0.0 }
  0x97   : > { %v442_v54 = vadd.f32 %v441_v45, %v427_v44 }
  0x99   : > { %v722_v14 = vpop.eup %721  ;;  %v465_v63 = vrot.slane %v442_v54, 4 }
  0x9a   : > { %v724_v33 = vpop.eup %723  ;;  %v376_v35 = vmul.f32 0.6931472, %v722_v14 }
  0x9b   : > { %v408_v36 = vmul.f32 0.6931472, %v724_v33  ;;  %v726_v41 = vpop.eup %725  ;;  %v466_v10 = vadd.f32 %v465_v63, %v442_v54 }
  0x9c   : > { %v377_v42 = vadd.f32 5.0, %v376_v35 }
  0x9d   : > { %v409_v34 = vadd.f32 5.0, %v408_v36  ;;  %v467_v13 = vrot.slane %v466_v10, 2 }
  0x9e   : > { %v378_v38 = vsel %vm372_vm3, %v377_v42, %v371_v9  ;;  %v728_v55 = vpop.eup %727 }
  0x9f   : > { %v379_v47 = vmul.f32 %v726_v41, %v378_v38  ;;  %v410_v48 = vsel %vm404_vm8, %v409_v34, %v403_v11  ;;  %v302_v24 = vmul.f32 0.6931472, %v728_v55  ;;  %v730_v0 = vpop.eup %729  ;;  %v468_v22 = vadd.f32 %v467_v13, %v466_v10 }
  0xa0   : > { %v411_v49 = vmul.f32 %v726_v41, %v410_v48 }
  0xa1   : > { %v380_v53 = vadd.f32 %v379_v47, %v1194_v61  ;;  %v303_v60 = vadd.f32 5.0, %v302_v24 }
  0xa2   : > { %v412_v56 = vadd.f32 %v411_v49, %v1194_v61 }
  0xa3   : > { %v381_v57 = vsel %vm254_vm5, %v380_v53, 0.0  ;;  %v304_v58 = vsel %vm298_vm4, %v303_v60, %v297_v27  ;;  %v469_v27 = vrot.slane %v468_v22, 1 }
  0xa4   : > { %v413_v59 = vsel %vm254_vm5, %v412_v56, 0.0  ;;  %v305_v5 = vsel %vm242_vm6, %v304_v58, 0.0  ;;  %v309_v6 = vmul.f32 0.5, %v304_v58 }
  0xa5   : > { %v414_v62 = vadd.f32 %v413_v59, %v381_v57  ;;  %v447_v7 = vrot.slane %v305_v5, 4  ;;  %v470_v8 = vadd.f32 %v469_v27, %v468_v22 }
  0xa6   : > { %v313_v11 = vmul.f32 %v730_v0, %v309_v6 }
  0xa7   : > { %v459_v4 = vrot.slane %v414_v62, 4  ;;  %v448_v1 = vadd.f32 %v447_v7, %v305_v5 }
  0xa8   : > { %v315_v61 = vadd.f32 %v1168_v37, %v313_v11 }
  0xa9   : > { %v460_v9 = vadd.f32 %v459_v4, %v414_v62  ;;  %v449_v50 = vrot.slane %v448_v1, 2 }
  0xaa   : > { %v316_v3 = vsel %vm243_vm0, %v315_v61, 0.0  ;;  %vm473_vm0 = vcmask 1041408  }
  0xab   : > { %v461_v12 = vrot.slane %v460_v9, 2  ;;  %v450_v17 = vadd.f32 %v449_v50, %v448_v1  ;;  %v453_v20 = vrot.slane %v316_v3, 4 }
  0xad   : > { %v462_v21 = vadd.f32 %v461_v12, %v460_v9  ;;  %v454_v52 = vadd.f32 %v453_v20, %v316_v3  ;;  %v451_v23 = vrot.slane %v450_v17, 1 }
  0xaf   : > { %v455_v25 = vrot.slane %v454_v52, 2  ;;  %v463_v26 = vrot.slane %v462_v21, 1  ;;  %v452_v37 = vadd.f32 %v451_v23, %v450_v17 }
  0xb1   : > { %v456_v15 = vadd.f32 %v455_v25, %v454_v52  ;;  %v464_v28 = vadd.f32 %v463_v26, %v462_v21 }
  0xb3   : > { %v457_v16 = vrot.slane %v456_v15, 1 }
  0xb5   : > { %v458_v2 = vadd.f32 %v457_v16, %v456_v15 }
  0xb7   : > { %v472_v29 = vsel %vm471_vm9, %v452_v37, %v458_v2 }
  0xb8   : > { %v474_v31 = vsel %vm473_vm0, %v472_v29, %v464_v28 }
  0xb9   : > { %v476_v32 = vsel %vm475_vm11, %v474_v31, %v470_v8 }
  0xba   : > { %v478_v46 = vadd.f32 %v477_v30, %v476_v32 }
  0xbc   : > { %479 = vst [vmem:[%s1081_s19] sm:$0xf] %v478_v46 }
  0xbd   : > { %804 = shalt.err (!%p801_p11)
}
  0xbe   : > { %s805_s4 = scalar_lea.hbm %s1276_s16, 64  ;;  %s809_s5 = scalar_lea.hbm %s1327_s2, 512 }
  0xbf   : > { %p806_p5 = scmp.ne.s32.totalorder %s1276_s16, %s805_s4  ;;  %p810_p3 = scmp.lt.u32.totalorder %s1276_s16, %s1327_s2 }
  0xc0   : > { %p811_p4 = scmp.lt.u32.totalorder %s809_s5, %s805_s4  ;;  %p813_p13 = scmp.lt.u32.totalorder %s805_s4, %s1276_s16 }
  0xc1   : > { %p807_p10 = pnand %p806_p5, %p1352_p2 }
  0xc2   : > { %p812_p8 = por %p811_p4, %p810_p3 }
  0xc3   : > { %p808_p1 = pneg %p807_p10 }
  0xc4   : > { %p814_p0 = por %p813_p13, %p812_p8 }
  0xc6   : > { %p815_p12 = pnand %p814_p0, %p808_p1 }
  0xc8   : > { %818 = shalt.err (!%p815_p12)
}
  0xc9   : > { %622 = dma.vmem_to_hbm [thread:$0]  (%p1352_p2), %s1278_s26, 64, %s1276_s16, %s481_s7  }
  0xca PF: > { %p636_p6 = scmp.ge.s32.totalorder %s877_s14, 2  ;;  %s506_s3 = sand.u32 1, %s857_s9  }
  0xcb   : > { %p1353_p7 = scmp.ne.s32.totalorder %s1333_s24, 0  ;;  %s507_s8 = scalar_lea.sflag [#allocation4], %s506_s3 }
  0xcd   : > { %p632_p9 = pnand %p636_p6, %p1353_p7 }
  0xcf   : > { %852 = dma.done.wait (!%p632_p9), %s507_s8, 64  }
  0xd0   : > { %854 = vsyncadd (!%p632_p9), %s507_s8, 4294967232  ;;  %s21_s14 = sadd.s32 1, %s877_s14   ;;  %s1354_s9 = smov %s861_s10 }
  0xd1   : > { %p18_p11 = scmp.ge.s32.totalorder %s21_s14, 10   ;;  %s1355_s10 = smov %s865_s11 }
  0xd2   : > { %s1356_s11 = smov %s957_s23  ;;  %s1357_s12 = smov %s873_s13 }
  0xd3   : > { %s1358_s13 = smov %s1360_s17  ;;  %20 = sbr.rel (!%p18_p11) target bundleno = 8 (0x8), region = 90 }
  0xda   :  { %512 = vsyncpa [#allocation3], 1 }
  0xdb   :  { %514 = vsyncpa [#allocation3 + $0x1], 1 }
  0xdc   :  { %515 = vsyncpa [#allocation6], 1 }
  0xdd   :  { %517 = vsyncpa [#allocation6 + $0x1], 1 }
  0xde   :  { %518 = vsyncpa [#allocation4], 1 }
  0xdf   :  { %520 = vsyncpa [#allocation4 + $0x1], 1 }

</bundles_post_ra>
